<compile_context>
chip_gen: v6e
topology: v6e:2x2x1
jax: 0.10.0
libtpu: 0.0.40
codegen_flags: <defaults>
</compile_context>

<pallas_src>
import functools

import jax
import jax.numpy as jnp
import numpy as np
from jax.experimental import pallas as pl
from jax.experimental.pallas import tpu as pltpu


def _lstm_kernel(x_ref, wih_ref, whh_ref, bias_ref, wlin_ref, blin_ref,
                 o_ref, gx_sc, hall_sc, *, T, B, H):
    # ---- Hoist every weight load once (values stay live across the loop).
    wih = wih_ref[...]       # (I, 4H)
    whh = whh_ref[...]       # (H, 4H)  -- stationary across the recurrence
    bias = bias_ref[...]     # (1, 4H)  -- fused b_ih + b_hh
    wlin = wlin_ref[...]     # (H, O)
    blin = blin_ref[...]     # (1, O)

    # ---- Phase 0: hoisted input projection (+ fused bias) for all timesteps.
    # Per-batch 2-D matmuls into a (B, T, 4H) scratch; row order matches the
    # batch-major I/O layout, so no reshapes/transposes are needed anywhere.
    for bi in range(B):
        gx_sc[bi, :, :] = (
            jnp.dot(x_ref[bi, :, :], wih, preferred_element_type=jnp.float32)
            + bias)                                           # (T, 4H)

    # ---- Phase 1: recurrence (fully unrolled). Only h @ W_hh + the gate
    # nonlinearities remain on the serial dependence chain.
    h = jnp.zeros((B, H), jnp.float32)
    c = jnp.zeros((B, H), jnp.float32)
    for t in range(T):
        g = gx_sc[:, t, :] + jnp.dot(h, whh,
                                     preferred_element_type=jnp.float32)  # (B, 4H)
        # Two full-vreg transcendentals instead of 3 sigmoids + 1 tanh on
        # (B, H) sub-slices; gates are then static lane slices.
        sg = jax.nn.sigmoid(g)                                # (B, 4H)
        tg = jnp.tanh(g)                                      # (B, 4H)
        # PyTorch gate order: i, f, g, o.
        i_g = sg[:, 0 * H:1 * H]
        f_g = sg[:, 1 * H:2 * H]
        g_g = tg[:, 2 * H:3 * H]
        o_g = sg[:, 3 * H:4 * H]
        c = f_g * c + i_g * g_g
        h = o_g * jnp.tanh(c)
        hall_sc[:, t, :] = h                                  # off critical path

    # ---- Phase 2: Linear head, hoisted; output written in (B, T, O) order
    # so the caller needs no transpose at all.
    for bi in range(B):
        y = jnp.dot(hall_sc[bi, :, :], wlin,
                    preferred_element_type=jnp.float32) + blin  # (T, O)
        o_ref[bi, :, :] = y.astype(o_ref.dtype)


def pack_params(params):
    """One-time weight prep (do this at init, not per forward call)."""
    return {
        "wih_t": jnp.transpose(params["w_ih"]),                       # (I, 4H)
        "whh_t": jnp.transpose(params["w_hh"]),                       # (H, 4H)
        "bias": (params["b_ih"] + params["b_hh"]).reshape(1, -1),     # (1, 4H)
        "wlin_t": jnp.transpose(params["w_lin"]),                     # (H, O)
        "blin": params["b_lin"].reshape(1, -1),                       # (1, O)
    }


def simple_lstm_forward(x, packed):
    """x: (B, T, I) float32. Returns (B, T, O). Matches nn.LSTM(batch_first)+Linear."""
    B, T, I = x.shape
    H = packed["whh_t"].shape[0]
    O = packed["wlin_t"].shape[1]

    kernel = functools.partial(_lstm_kernel, T=T, B=B, H=H)

    # Whole problem fits VMEM at these shapes -> single invocation, no grid,
    # every operand resident in VMEM for the full kernel. No XLA ops surround
    # the call (weights already packed; x and the output stay batch-major).
    return pl.pallas_call(
        kernel,
        out_shape=jax.ShapeDtypeStruct((B, T, O), jnp.float32),
        in_specs=[pl.BlockSpec(memory_space=pltpu.MemorySpace.VMEM)] * 6,
        out_specs=pl.BlockSpec(memory_space=pltpu.MemorySpace.VMEM),
        scratch_shapes=[
            pltpu.VMEM((B, T, 4 * H), jnp.float32),   # hoisted input projection
            pltpu.VMEM((B, T, H), jnp.float32),       # h_t for all T (head input)
        ],
    )(x, packed["wih_t"], packed["whh_t"], packed["bias"],
      packed["wlin_t"], packed["blin"])


def simple_lstm_reference(x, params):
    """Pure-JAX reference matching torch.nn.LSTM(batch_first=True)+Linear."""
    w_ih, w_hh, b_ih, b_hh, w_lin, b_lin = (
        params["w_ih"], params["w_hh"], params["b_ih"], params["b_hh"],
        params["w_lin"], params["b_lin"])
    B, T, I = x.shape
    H = w_hh.shape[1]

    def step(carry, x_t):
        h, c = carry
        gates = x_t @ w_ih.T + h @ w_hh.T + b_ih + b_hh
        i = jax.nn.sigmoid(gates[:, 0 * H:1 * H])
        f = jax.nn.sigmoid(gates[:, 1 * H:2 * H])
        g = jnp.tanh(gates[:, 2 * H:3 * H])
        o = jax.nn.sigmoid(gates[:, 3 * H:4 * H])
        c = f * c + i * g
        h = o * jnp.tanh(c)
        return (h, c), h

    h0 = jnp.zeros((B, H), jnp.float32)
    c0 = jnp.zeros((B, H), jnp.float32)
    _, hs = jax.lax.scan(step, (h0, c0), jnp.transpose(x, (1, 0, 2)))
    y = hs @ w_lin.T + b_lin                  # (T, B, O)
    return jnp.transpose(y, (1, 0, 2))


def init_params(key, input_size, hidden_size, output_size):
    ks = jax.random.split(key, 6)
    s_lstm = 1.0 / np.sqrt(hidden_size)
    s_lin = 1.0 / np.sqrt(hidden_size)
    return {
        "w_ih": jax.random.uniform(ks[0], (4 * hidden_size, input_size),
                                   jnp.float32, -s_lstm, s_lstm),
        "w_hh": jax.random.uniform(ks[1], (4 * hidden_size, hidden_size),
                                   jnp.float32, -s_lstm, s_lstm),
        "b_ih": jax.random.uniform(ks[2], (4 * hidden_size,),
                                   jnp.float32, -s_lstm, s_lstm),
        "b_hh": jax.random.uniform(ks[3], (4 * hidden_size,),
                                   jnp.float32, -s_lstm, s_lstm),
        "w_lin": jax.random.uniform(ks[4], (output_size, hidden_size),
                                    jnp.float32, -s_lin, s_lin),
        "b_lin": jax.random.uniform(ks[5], (output_size,),
                                    jnp.float32, -s_lin, s_lin),
    }


if __name__ == "__main__":
    B, T, INPUT, HIDDEN, OUTPUT = 2, 8, 4, 32, 3

    key = jax.random.PRNGKey(0)
    k_x, k_p = jax.random.split(key)
    x = jax.random.normal(k_x, (B, T, INPUT), jnp.float32)
    params = init_params(k_p, INPUT, HIDDEN, OUTPUT)
    packed = pack_params(params)        # one-time weight prep, off per-call path

    y = jax.block_until_ready(simple_lstm_forward(x, packed))

    y_ref = jax.block_until_ready(simple_lstm_reference(x, params))
    np.testing.assert_allclose(np.asarray(y), np.asarray(y_ref),
                               rtol=1e-5, atol=1e-5)
    assert y.shape == (B, T, OUTPUT)
    print("KERNEL_OK")
</pallas_src>

<mosaic_0001>
module attributes {stable_mosaic.version = 11 : i64} {
  func.func @_lstm_kernel(%arg0: memref<2x8x4xf32, #tpu.memory_space<vmem>>, %arg1: memref<4x128xf32, #tpu.memory_space<vmem>>, %arg2: memref<32x128xf32, #tpu.memory_space<vmem>>, %arg3: memref<1x128xf32, #tpu.memory_space<vmem>>, %arg4: memref<32x3xf32, #tpu.memory_space<vmem>>, %arg5: memref<1x3xf32, #tpu.memory_space<vmem>>, %arg6: memref<2x8x3xf32, #tpu.memory_space<vmem>>, %arg7: memref<2x8x128xf32, #tpu.memory_space<vmem>>, %arg8: memref<2x8x32xf32, #tpu.memory_space<vmem>>) attributes {dimension_semantics = [], scalar_prefetch = 0 : i64, scratch_operands = 2 : i64, tpu.core_type = #tpu.core_type<tc>} {
    %c0 = arith.constant 0 : index
    %c0_0 = arith.constant 0 : index
    %0 = vector.load %arg1[%c0, %c0_0] : memref<4x128xf32, #tpu.memory_space<vmem>>, vector<4x128xf32>
    %c0_1 = arith.constant 0 : index
    %c0_2 = arith.constant 0 : index
    %1 = vector.load %arg2[%c0_1, %c0_2] : memref<32x128xf32, #tpu.memory_space<vmem>>, vector<32x128xf32>
    %c0_3 = arith.constant 0 : index
    %c0_4 = arith.constant 0 : index
    %2 = vector.load %arg3[%c0_3, %c0_4] : memref<1x128xf32, #tpu.memory_space<vmem>>, vector<1x128xf32>
    %c0_5 = arith.constant 0 : index
    %c0_6 = arith.constant 0 : index
    %3 = vector.load %arg4[%c0_5, %c0_6] : memref<32x3xf32, #tpu.memory_space<vmem>>, vector<32x3xf32>
    %c0_7 = arith.constant 0 : index
    %c0_8 = arith.constant 0 : index
    %4 = vector.load %arg5[%c0_7, %c0_8] : memref<1x3xf32, #tpu.memory_space<vmem>>, vector<1x3xf32>
    %c0_9 = arith.constant 0 : index
    %c0_10 = arith.constant 0 : index
    %c0_11 = arith.constant 0 : index
    %5 = vector.load %arg0[%c0_9, %c0_10, %c0_11] : memref<2x8x4xf32, #tpu.memory_space<vmem>>, vector<1x8x4xf32>
    %6 = vector.shape_cast %5 : vector<1x8x4xf32> to vector<8x4xf32>
    %cst = arith.constant dense<0.000000e+00> : vector<8x128xf32>
    %7 = tpu.matmul %6, %0, %cst {dimension_numbers = #tpu.dot_dimension_numbers<[1], [0], [0], [1], [0, 0, 1, 1], [], []>} : vector<8x4xf32>, vector<4x128xf32>, vector<8x128xf32> -> vector<8x128xf32>
    %8 = vector.broadcast %2 : vector<1x128xf32> to vector<8x128xf32>
    %9 = arith.addf %7, %8 : vector<8x128xf32>
    %c0_12 = arith.constant 0 : index
    %c0_13 = arith.constant 0 : index
    %c0_14 = arith.constant 0 : index
    %10 = vector.load %arg7[%c0_12, %c0_13, %c0_14] : memref<2x8x128xf32, #tpu.memory_space<vmem>>, vector<1x8x128xf32>
    %11 = vector.shape_cast %10 : vector<1x8x128xf32> to vector<8x128xf32>
    %12 = vector.shape_cast %9 : vector<8x128xf32> to vector<1x8x128xf32>
    tpu.vector_store %arg7[%c0_12, %c0_13, %c0_14], %12 {strides = array<i32>} : memref<2x8x128xf32, #tpu.memory_space<vmem>>, vector<1x8x128xf32>,
    %c1 = arith.constant 1 : index
    %c0_15 = arith.constant 0 : index
    %c0_16 = arith.constant 0 : index
    %13 = vector.load %arg0[%c1, %c0_15, %c0_16] : memref<2x8x4xf32, #tpu.memory_space<vmem>>, vector<1x8x4xf32>
    %14 = vector.shape_cast %13 : vector<1x8x4xf32> to vector<8x4xf32>
    %cst_17 = arith.constant dense<0.000000e+00> : vector<8x128xf32>
    %15 = tpu.matmul %14, %0, %cst_17 {dimension_numbers = #tpu.dot_dimension_numbers<[1], [0], [0], [1], [0, 0, 1, 1], [], []>} : vector<8x4xf32>, vector<4x128xf32>, vector<8x128xf32> -> vector<8x128xf32>
    %16 = vector.broadcast %2 : vector<1x128xf32> to vector<8x128xf32>
    %17 = arith.addf %15, %16 : vector<8x128xf32>
    %c1_18 = arith.constant 1 : index
    %c0_19 = arith.constant 0 : index
    %c0_20 = arith.constant 0 : index
    %18 = vector.load %arg7[%c1_18, %c0_19, %c0_20] : memref<2x8x128xf32, #tpu.memory_space<vmem>>, vector<1x8x128xf32>
    %19 = vector.shape_cast %18 : vector<1x8x128xf32> to vector<8x128xf32>
    %20 = vector.shape_cast %17 : vector<8x128xf32> to vector<1x8x128xf32>
    tpu.vector_store %arg7[%c1_18, %c0_19, %c0_20], %20 {strides = array<i32>} : memref<2x8x128xf32, #tpu.memory_space<vmem>>, vector<1x8x128xf32>,
    %cst_21 = arith.constant 0.000000e+00 : f32
    %21 = vector.broadcast %cst_21 : f32 to vector<2x32xf32>
    %cst_22 = arith.constant 0.000000e+00 : f32
    %22 = vector.broadcast %cst_22 : f32 to vector<2x32xf32>
    %c0_23 = arith.constant 0 : index
    %c0_24 = arith.constant 0 : index
    %c0_25 = arith.constant 0 : index
    %23 = vector.load %arg7[%c0_23, %c0_24, %c0_25] : memref<2x8x128xf32, #tpu.memory_space<vmem>>, vector<2x1x128xf32>
    %24 = vector.shape_cast %23 : vector<2x1x128xf32> to vector<2x128xf32>
    %cst_26 = arith.constant dense<0.000000e+00> : vector<2x128xf32>
    %25 = tpu.matmul %21, %1, %cst_26 {dimension_numbers = #tpu.dot_dimension_numbers<[1], [0], [0], [1], [0, 0, 1, 1], [], []>} : vector<2x32xf32>, vector<32x128xf32>, vector<2x128xf32> -> vector<2x128xf32>
    %26 = arith.addf %24, %25 : vector<2x128xf32>
    %27 = arith.negf %26 : vector<2x128xf32>
    %28 = math.exp %27 : vector<2x128xf32>
    %cst_27 = arith.constant 1.000000e+00 : f32
    %29 = vector.broadcast %cst_27 : f32 to vector<2x128xf32>
    %30 = arith.addf %29, %28 : vector<2x128xf32>
    %31 = arith.divf %29, %30 : vector<2x128xf32>
    %32 = math.tanh %26 : vector<2x128xf32>
    %33 = vector.extract_strided_slice %31 {offsets = [0, 0], sizes = [2, 32], strides = [1, 1]} : vector<2x128xf32> to vector<2x32xf32>
    %34 = vector.extract_strided_slice %31 {offsets = [0, 32], sizes = [2, 32], strides = [1, 1]} : vector<2x128xf32> to vector<2x32xf32>
    %35 = vector.extract_strided_slice %32 {offsets = [0, 64], sizes = [2, 32], strides = [1, 1]} : vector<2x128xf32> to vector<2x32xf32>
    %36 = vector.extract_strided_slice %31 {offsets = [0, 96], sizes = [2, 32], strides = [1, 1]} : vector<2x128xf32> to vector<2x32xf32>
    %37 = arith.mulf %34, %22 : vector<2x32xf32>
    %38 = arith.mulf %33, %35 : vector<2x32xf32>
    %39 = arith.addf %37, %38 : vector<2x32xf32>
    %40 = math.tanh %39 : vector<2x32xf32>
    %41 = arith.mulf %36, %40 : vector<2x32xf32>
    %c0_28 = arith.constant 0 : index
    %c0_29 = arith.constant 0 : index
    %c0_30 = arith.constant 0 : index
    %42 = vector.load %arg8[%c0_28, %c0_29, %c0_30] : memref<2x8x32xf32, #tpu.memory_space<vmem>>, vector<2x1x32xf32>
    %43 = vector.shape_cast %42 : vector<2x1x32xf32> to vector<2x32xf32>
    %44 = vector.shape_cast %41 : vector<2x32xf32> to vector<2x1x32xf32>
    tpu.vector_store %arg8[%c0_28, %c0_29, %c0_30], %44 {strides = array<i32>} : memref<2x8x32xf32, #tpu.memory_space<vmem>>, vector<2x1x32xf32>,
    %c0_31 = arith.constant 0 : index
    %c1_32 = arith.constant 1 : index
    %c0_33 = arith.constant 0 : index
    %45 = vector.load %arg7[%c0_31, %c1_32, %c0_33] : memref<2x8x128xf32, #tpu.memory_space<vmem>>, vector<2x1x128xf32>
    %46 = vector.shape_cast %45 : vector<2x1x128xf32> to vector<2x128xf32>
    %cst_34 = arith.constant dense<0.000000e+00> : vector<2x128xf32>
    %47 = tpu.matmul %41, %1, %cst_34 {dimension_numbers = #tpu.dot_dimension_numbers<[1], [0], [0], [1], [0, 0, 1, 1], [], []>} : vector<2x32xf32>, vector<32x128xf32>, vector<2x128xf32> -> vector<2x128xf32>
    %48 = arith.addf %46, %47 : vector<2x128xf32>
    %49 = arith.negf %48 : vector<2x128xf32>
    %50 = math.exp %49 : vector<2x128xf32>
    %cst_35 = arith.constant 1.000000e+00 : f32
    %51 = vector.broadcast %cst_35 : f32 to vector<2x128xf32>
    %52 = arith.addf %51, %50 : vector<2x128xf32>
    %53 = arith.divf %51, %52 : vector<2x128xf32>
    %54 = math.tanh %48 : vector<2x128xf32>
    %55 = vector.extract_strided_slice %53 {offsets = [0, 0], sizes = [2, 32], strides = [1, 1]} : vector<2x128xf32> to vector<2x32xf32>
    %56 = vector.extract_strided_slice %53 {offsets = [0, 32], sizes = [2, 32], strides = [1, 1]} : vector<2x128xf32> to vector<2x32xf32>
    %57 = vector.extract_strided_slice %54 {offsets = [0, 64], sizes = [2, 32], strides = [1, 1]} : vector<2x128xf32> to vector<2x32xf32>
    %58 = vector.extract_strided_slice %53 {offsets = [0, 96], sizes = [2, 32], strides = [1, 1]} : vector<2x128xf32> to vector<2x32xf32>
    %59 = arith.mulf %56, %39 : vector<2x32xf32>
    %60 = arith.mulf %55, %57 : vector<2x32xf32>
    %61 = arith.addf %59, %60 : vector<2x32xf32>
    %62 = math.tanh %61 : vector<2x32xf32>
    %63 = arith.mulf %58, %62 : vector<2x32xf32>
    %c0_36 = arith.constant 0 : index
    %c1_37 = arith.constant 1 : index
    %c0_38 = arith.constant 0 : index
    %64 = vector.load %arg8[%c0_36, %c1_37, %c0_38] : memref<2x8x32xf32, #tpu.memory_space<vmem>>, vector<2x1x32xf32>
    %65 = vector.shape_cast %64 : vector<2x1x32xf32> to vector<2x32xf32>
    %66 = vector.shape_cast %63 : vector<2x32xf32> to vector<2x1x32xf32>
    tpu.vector_store %arg8[%c0_36, %c1_37, %c0_38], %66 {strides = array<i32>} : memref<2x8x32xf32, #tpu.memory_space<vmem>>, vector<2x1x32xf32>,
    %c0_39 = arith.constant 0 : index
    %c2 = arith.constant 2 : index
    %c0_40 = arith.constant 0 : index
    %67 = vector.load %arg7[%c0_39, %c2, %c0_40] : memref<2x8x128xf32, #tpu.memory_space<vmem>>, vector<2x1x128xf32>
    %68 = vector.shape_cast %67 : vector<2x1x128xf32> to vector<2x128xf32>
    %cst_41 = arith.constant dense<0.000000e+00> : vector<2x128xf32>
    %69 = tpu.matmul %63, %1, %cst_41 {dimension_numbers = #tpu.dot_dimension_numbers<[1], [0], [0], [1], [0, 0, 1, 1], [], []>} : vector<2x32xf32>, vector<32x128xf32>, vector<2x128xf32> -> vector<2x128xf32>
    %70 = arith.addf %68, %69 : vector<2x128xf32>
    %71 = arith.negf %70 : vector<2x128xf32>
    %72 = math.exp %71 : vector<2x128xf32>
    %cst_42 = arith.constant 1.000000e+00 : f32
    %73 = vector.broadcast %cst_42 : f32 to vector<2x128xf32>
    %74 = arith.addf %73, %72 : vector<2x128xf32>
    %75 = arith.divf %73, %74 : vector<2x128xf32>
    %76 = math.tanh %70 : vector<2x128xf32>
    %77 = vector.extract_strided_slice %75 {offsets = [0, 0], sizes = [2, 32], strides = [1, 1]} : vector<2x128xf32> to vector<2x32xf32>
    %78 = vector.extract_strided_slice %75 {offsets = [0, 32], sizes = [2, 32], strides = [1, 1]} : vector<2x128xf32> to vector<2x32xf32>
    %79 = vector.extract_strided_slice %76 {offsets = [0, 64], sizes = [2, 32], strides = [1, 1]} : vector<2x128xf32> to vector<2x32xf32>
    %80 = vector.extract_strided_slice %75 {offsets = [0, 96], sizes = [2, 32], strides = [1, 1]} : vector<2x128xf32> to vector<2x32xf32>
    %81 = arith.mulf %78, %61 : vector<2x32xf32>
    %82 = arith.mulf %77, %79 : vector<2x32xf32>
    %83 = arith.addf %81, %82 : vector<2x32xf32>
    %84 = math.tanh %83 : vector<2x32xf32>
    %85 = arith.mulf %80, %84 : vector<2x32xf32>
    %c0_43 = arith.constant 0 : index
    %c2_44 = arith.constant 2 : index
    %c0_45 = arith.constant 0 : index
    %86 = vector.load %arg8[%c0_43, %c2_44, %c0_45] : memref<2x8x32xf32, #tpu.memory_space<vmem>>, vector<2x1x32xf32>
    %87 = vector.shape_cast %86 : vector<2x1x32xf32> to vector<2x32xf32>
    %88 = vector.shape_cast %85 : vector<2x32xf32> to vector<2x1x32xf32>
    tpu.vector_store %arg8[%c0_43, %c2_44, %c0_45], %88 {strides = array<i32>} : memref<2x8x32xf32, #tpu.memory_space<vmem>>, vector<2x1x32xf32>,
    %c0_46 = arith.constant 0 : index
    %c3 = arith.constant 3 : index
    %c0_47 = arith.constant 0 : index
    %89 = vector.load %arg7[%c0_46, %c3, %c0_47] : memref<2x8x128xf32, #tpu.memory_space<vmem>>, vector<2x1x128xf32>
    %90 = vector.shape_cast %89 : vector<2x1x128xf32> to vector<2x128xf32>
    %cst_48 = arith.constant dense<0.000000e+00> : vector<2x128xf32>
    %91 = tpu.matmul %85, %1, %cst_48 {dimension_numbers = #tpu.dot_dimension_numbers<[1], [0], [0], [1], [0, 0, 1, 1], [], []>} : vector<2x32xf32>, vector<32x128xf32>, vector<2x128xf32> -> vector<2x128xf32>
    %92 = arith.addf %90, %91 : vector<2x128xf32>
    %93 = arith.negf %92 : vector<2x128xf32>
    %94 = math.exp %93 : vector<2x128xf32>
    %cst_49 = arith.constant 1.000000e+00 : f32
    %95 = vector.broadcast %cst_49 : f32 to vector<2x128xf32>
    %96 = arith.addf %95, %94 : vector<2x128xf32>
    %97 = arith.divf %95, %96 : vector<2x128xf32>
    %98 = math.tanh %92 : vector<2x128xf32>
    %99 = vector.extract_strided_slice %97 {offsets = [0, 0], sizes = [2, 32], strides = [1, 1]} : vector<2x128xf32> to vector<2x32xf32>
    %100 = vector.extract_strided_slice %97 {offsets = [0, 32], sizes = [2, 32], strides = [1, 1]} : vector<2x128xf32> to vector<2x32xf32>
    %101 = vector.extract_strided_slice %98 {offsets = [0, 64], sizes = [2, 32], strides = [1, 1]} : vector<2x128xf32> to vector<2x32xf32>
    %102 = vector.extract_strided_slice %97 {offsets = [0, 96], sizes = [2, 32], strides = [1, 1]} : vector<2x128xf32> to vector<2x32xf32>
    %103 = arith.mulf %100, %83 : vector<2x32xf32>
    %104 = arith.mulf %99, %101 : vector<2x32xf32>
    %105 = arith.addf %103, %104 : vector<2x32xf32>
    %106 = math.tanh %105 : vector<2x32xf32>
    %107 = arith.mulf %102, %106 : vector<2x32xf32>
    %c0_50 = arith.constant 0 : index
    %c3_51 = arith.constant 3 : index
    %c0_52 = arith.constant 0 : index
    %108 = vector.load %arg8[%c0_50, %c3_51, %c0_52] : memref<2x8x32xf32, #tpu.memory_space<vmem>>, vector<2x1x32xf32>
    %109 = vector.shape_cast %108 : vector<2x1x32xf32> to vector<2x32xf32>
    %110 = vector.shape_cast %107 : vector<2x32xf32> to vector<2x1x32xf32>
    tpu.vector_store %arg8[%c0_50, %c3_51, %c0_52], %110 {strides = array<i32>} : memref<2x8x32xf32, #tpu.memory_space<vmem>>, vector<2x1x32xf32>,
    %c0_53 = arith.constant 0 : index
    %c4 = arith.constant 4 : index
    %c0_54 = arith.constant 0 : index
    %111 = vector.load %arg7[%c0_53, %c4, %c0_54] : memref<2x8x128xf32, #tpu.memory_space<vmem>>, vector<2x1x128xf32>
    %112 = vector.shape_cast %111 : vector<2x1x128xf32> to vector<2x128xf32>
    %cst_55 = arith.constant dense<0.000000e+00> : vector<2x128xf32>
    %113 = tpu.matmul %107, %1, %cst_55 {dimension_numbers = #tpu.dot_dimension_numbers<[1], [0], [0], [1], [0, 0, 1, 1], [], []>} : vector<2x32xf32>, vector<32x128xf32>, vector<2x128xf32> -> vector<2x128xf32>
    %114 = arith.addf %112, %113 : vector<2x128xf32>
    %115 = arith.negf %114 : vector<2x128xf32>
    %116 = math.exp %115 : vector<2x128xf32>
    %cst_56 = arith.constant 1.000000e+00 : f32
    %117 = vector.broadcast %cst_56 : f32 to vector<2x128xf32>
    %118 = arith.addf %117, %116 : vector<2x128xf32>
    %119 = arith.divf %117, %118 : vector<2x128xf32>
    %120 = math.tanh %114 : vector<2x128xf32>
    %121 = vector.extract_strided_slice %119 {offsets = [0, 0], sizes = [2, 32], strides = [1, 1]} : vector<2x128xf32> to vector<2x32xf32>
    %122 = vector.extract_strided_slice %119 {offsets = [0, 32], sizes = [2, 32], strides = [1, 1]} : vector<2x128xf32> to vector<2x32xf32>
    %123 = vector.extract_strided_slice %120 {offsets = [0, 64], sizes = [2, 32], strides = [1, 1]} : vector<2x128xf32> to vector<2x32xf32>
    %124 = vector.extract_strided_slice %119 {offsets = [0, 96], sizes = [2, 32], strides = [1, 1]} : vector<2x128xf32> to vector<2x32xf32>
    %125 = arith.mulf %122, %105 : vector<2x32xf32>
    %126 = arith.mulf %121, %123 : vector<2x32xf32>
    %127 = arith.addf %125, %126 : vector<2x32xf32>
    %128 = math.tanh %127 : vector<2x32xf32>
    %129 = arith.mulf %124, %128 : vector<2x32xf32>
    %c0_57 = arith.constant 0 : index
    %c4_58 = arith.constant 4 : index
    %c0_59 = arith.constant 0 : index
    %130 = vector.load %arg8[%c0_57, %c4_58, %c0_59] : memref<2x8x32xf32, #tpu.memory_space<vmem>>, vector<2x1x32xf32>
    %131 = vector.shape_cast %130 : vector<2x1x32xf32> to vector<2x32xf32>
    %132 = vector.shape_cast %129 : vector<2x32xf32> to vector<2x1x32xf32>
    tpu.vector_store %arg8[%c0_57, %c4_58, %c0_59], %132 {strides = array<i32>} : memref<2x8x32xf32, #tpu.memory_space<vmem>>, vector<2x1x32xf32>,
    %c0_60 = arith.constant 0 : index
    %c5 = arith.constant 5 : index
    %c0_61 = arith.constant 0 : index
    %133 = vector.load %arg7[%c0_60, %c5, %c0_61] : memref<2x8x128xf32, #tpu.memory_space<vmem>>, vector<2x1x128xf32>
    %134 = vector.shape_cast %133 : vector<2x1x128xf32> to vector<2x128xf32>
    %cst_62 = arith.constant dense<0.000000e+00> : vector<2x128xf32>
    %135 = tpu.matmul %129, %1, %cst_62 {dimension_numbers = #tpu.dot_dimension_numbers<[1], [0], [0], [1], [0, 0, 1, 1], [], []>} : vector<2x32xf32>, vector<32x128xf32>, vector<2x128xf32> -> vector<2x128xf32>
    %136 = arith.addf %134, %135 : vector<2x128xf32>
    %137 = arith.negf %136 : vector<2x128xf32>
    %138 = math.exp %137 : vector<2x128xf32>
    %cst_63 = arith.constant 1.000000e+00 : f32
    %139 = vector.broadcast %cst_63 : f32 to vector<2x128xf32>
    %140 = arith.addf %139, %138 : vector<2x128xf32>
    %141 = arith.divf %139, %140 : vector<2x128xf32>
    %142 = math.tanh %136 : vector<2x128xf32>
    %143 = vector.extract_strided_slice %141 {offsets = [0, 0], sizes = [2, 32], strides = [1, 1]} : vector<2x128xf32> to vector<2x32xf32>
    %144 = vector.extract_strided_slice %141 {offsets = [0, 32], sizes = [2, 32], strides = [1, 1]} : vector<2x128xf32> to vector<2x32xf32>
    %145 = vector.extract_strided_slice %142 {offsets = [0, 64], sizes = [2, 32], strides = [1, 1]} : vector<2x128xf32> to vector<2x32xf32>
    %146 = vector.extract_strided_slice %141 {offsets = [0, 96], sizes = [2, 32], strides = [1, 1]} : vector<2x128xf32> to vector<2x32xf32>
    %147 = arith.mulf %144, %127 : vector<2x32xf32>
    %148 = arith.mulf %143, %145 : vector<2x32xf32>
    %149 = arith.addf %147, %148 : vector<2x32xf32>
    %150 = math.tanh %149 : vector<2x32xf32>
    %151 = arith.mulf %146, %150 : vector<2x32xf32>
    %c0_64 = arith.constant 0 : index
    %c5_65 = arith.constant 5 : index
    %c0_66 = arith.constant 0 : index
    %152 = vector.load %arg8[%c0_64, %c5_65, %c0_66] : memref<2x8x32xf32, #tpu.memory_space<vmem>>, vector<2x1x32xf32>
    %153 = vector.shape_cast %152 : vector<2x1x32xf32> to vector<2x32xf32>
    %154 = vector.shape_cast %151 : vector<2x32xf32> to vector<2x1x32xf32>
    tpu.vector_store %arg8[%c0_64, %c5_65, %c0_66], %154 {strides = array<i32>} : memref<2x8x32xf32, #tpu.memory_space<vmem>>, vector<2x1x32xf32>,
    %c0_67 = arith.constant 0 : index
    %c6 = arith.constant 6 : index
    %c0_68 = arith.constant 0 : index
    %155 = vector.load %arg7[%c0_67, %c6, %c0_68] : memref<2x8x128xf32, #tpu.memory_space<vmem>>, vector<2x1x128xf32>
    %156 = vector.shape_cast %155 : vector<2x1x128xf32> to vector<2x128xf32>
    %cst_69 = arith.constant dense<0.000000e+00> : vector<2x128xf32>
    %157 = tpu.matmul %151, %1, %cst_69 {dimension_numbers = #tpu.dot_dimension_numbers<[1], [0], [0], [1], [0, 0, 1, 1], [], []>} : vector<2x32xf32>, vector<32x128xf32>, vector<2x128xf32> -> vector<2x128xf32>
    %158 = arith.addf %156, %157 : vector<2x128xf32>
    %159 = arith.negf %158 : vector<2x128xf32>
    %160 = math.exp %159 : vector<2x128xf32>
    %cst_70 = arith.constant 1.000000e+00 : f32
    %161 = vector.broadcast %cst_70 : f32 to vector<2x128xf32>
    %162 = arith.addf %161, %160 : vector<2x128xf32>
    %163 = arith.divf %161, %162 : vector<2x128xf32>
    %164 = math.tanh %158 : vector<2x128xf32>
    %165 = vector.extract_strided_slice %163 {offsets = [0, 0], sizes = [2, 32], strides = [1, 1]} : vector<2x128xf32> to vector<2x32xf32>
    %166 = vector.extract_strided_slice %163 {offsets = [0, 32], sizes = [2, 32], strides = [1, 1]} : vector<2x128xf32> to vector<2x32xf32>
    %167 = vector.extract_strided_slice %164 {offsets = [0, 64], sizes = [2, 32], strides = [1, 1]} : vector<2x128xf32> to vector<2x32xf32>
    %168 = vector.extract_strided_slice %163 {offsets = [0, 96], sizes = [2, 32], strides = [1, 1]} : vector<2x128xf32> to vector<2x32xf32>
    %169 = arith.mulf %166, %149 : vector<2x32xf32>
    %170 = arith.mulf %165, %167 : vector<2x32xf32>
    %171 = arith.addf %169, %170 : vector<2x32xf32>
    %172 = math.tanh %171 : vector<2x32xf32>
    %173 = arith.mulf %168, %172 : vector<2x32xf32>
    %c0_71 = arith.constant 0 : index
    %c6_72 = arith.constant 6 : index
    %c0_73 = arith.constant 0 : index
    %174 = vector.load %arg8[%c0_71, %c6_72, %c0_73] : memref<2x8x32xf32, #tpu.memory_space<vmem>>, vector<2x1x32xf32>
    %175 = vector.shape_cast %174 : vector<2x1x32xf32> to vector<2x32xf32>
    %176 = vector.shape_cast %173 : vector<2x32xf32> to vector<2x1x32xf32>
    tpu.vector_store %arg8[%c0_71, %c6_72, %c0_73], %176 {strides = array<i32>} : memref<2x8x32xf32, #tpu.memory_space<vmem>>, vector<2x1x32xf32>,
    %c0_74 = arith.constant 0 : index
    %c7 = arith.constant 7 : index
    %c0_75 = arith.constant 0 : index
    %177 = vector.load %arg7[%c0_74, %c7, %c0_75] : memref<2x8x128xf32, #tpu.memory_space<vmem>>, vector<2x1x128xf32>
    %178 = vector.shape_cast %177 : vector<2x1x128xf32> to vector<2x128xf32>
    %cst_76 = arith.constant dense<0.000000e+00> : vector<2x128xf32>
    %179 = tpu.matmul %173, %1, %cst_76 {dimension_numbers = #tpu.dot_dimension_numbers<[1], [0], [0], [1], [0, 0, 1, 1], [], []>} : vector<2x32xf32>, vector<32x128xf32>, vector<2x128xf32> -> vector<2x128xf32>
    %180 = arith.addf %178, %179 : vector<2x128xf32>
    %181 = arith.negf %180 : vector<2x128xf32>
    %182 = math.exp %181 : vector<2x128xf32>
    %cst_77 = arith.constant 1.000000e+00 : f32
    %183 = vector.broadcast %cst_77 : f32 to vector<2x128xf32>
    %184 = arith.addf %183, %182 : vector<2x128xf32>
    %185 = arith.divf %183, %184 : vector<2x128xf32>
    %186 = math.tanh %180 : vector<2x128xf32>
    %187 = vector.extract_strided_slice %185 {offsets = [0, 0], sizes = [2, 32], strides = [1, 1]} : vector<2x128xf32> to vector<2x32xf32>
    %188 = vector.extract_strided_slice %185 {offsets = [0, 32], sizes = [2, 32], strides = [1, 1]} : vector<2x128xf32> to vector<2x32xf32>
    %189 = vector.extract_strided_slice %186 {offsets = [0, 64], sizes = [2, 32], strides = [1, 1]} : vector<2x128xf32> to vector<2x32xf32>
    %190 = vector.extract_strided_slice %185 {offsets = [0, 96], sizes = [2, 32], strides = [1, 1]} : vector<2x128xf32> to vector<2x32xf32>
    %191 = arith.mulf %188, %171 : vector<2x32xf32>
    %192 = arith.mulf %187, %189 : vector<2x32xf32>
    %193 = arith.addf %191, %192 : vector<2x32xf32>
    %194 = math.tanh %193 : vector<2x32xf32>
    %195 = arith.mulf %190, %194 : vector<2x32xf32>
    %c0_78 = arith.constant 0 : index
    %c7_79 = arith.constant 7 : index
    %c0_80 = arith.constant 0 : index
    %196 = vector.load %arg8[%c0_78, %c7_79, %c0_80] : memref<2x8x32xf32, #tpu.memory_space<vmem>>, vector<2x1x32xf32>
    %197 = vector.shape_cast %196 : vector<2x1x32xf32> to vector<2x32xf32>
    %198 = vector.shape_cast %195 : vector<2x32xf32> to vector<2x1x32xf32>
    tpu.vector_store %arg8[%c0_78, %c7_79, %c0_80], %198 {strides = array<i32>} : memref<2x8x32xf32, #tpu.memory_space<vmem>>, vector<2x1x32xf32>,
    %c0_81 = arith.constant 0 : index
    %c0_82 = arith.constant 0 : index
    %c0_83 = arith.constant 0 : index
    %199 = vector.load %arg8[%c0_81, %c0_82, %c0_83] : memref<2x8x32xf32, #tpu.memory_space<vmem>>, vector<1x8x32xf32>
    %200 = vector.shape_cast %199 : vector<1x8x32xf32> to vector<8x32xf32>
    %cst_84 = arith.constant dense<0.000000e+00> : vector<8x3xf32>
    %201 = tpu.matmul %200, %3, %cst_84 {dimension_numbers = #tpu.dot_dimension_numbers<[1], [0], [0], [1], [0, 0, 1, 1], [], []>} : vector<8x32xf32>, vector<32x3xf32>, vector<8x3xf32> -> vector<8x3xf32>
    %202 = vector.broadcast %4 : vector<1x3xf32> to vector<8x3xf32>
    %203 = arith.addf %201, %202 : vector<8x3xf32>
    %c0_85 = arith.constant 0 : index
    %c0_86 = arith.constant 0 : index
    %c0_87 = arith.constant 0 : index
    %204 = vector.load %arg6[%c0_85, %c0_86, %c0_87] : memref<2x8x3xf32, #tpu.memory_space<vmem>>, vector<1x8x3xf32>
    %205 = vector.shape_cast %204 : vector<1x8x3xf32> to vector<8x3xf32>
    %206 = vector.shape_cast %203 : vector<8x3xf32> to vector<1x8x3xf32>
    tpu.vector_store %arg6[%c0_85, %c0_86, %c0_87], %206 {strides = array<i32>} : memref<2x8x3xf32, #tpu.memory_space<vmem>>, vector<1x8x3xf32>,
    %c1_88 = arith.constant 1 : index
    %c0_89 = arith.constant 0 : index
    %c0_90 = arith.constant 0 : index
    %207 = vector.load %arg8[%c1_88, %c0_89, %c0_90] : memref<2x8x32xf32, #tpu.memory_space<vmem>>, vector<1x8x32xf32>
    %208 = vector.shape_cast %207 : vector<1x8x32xf32> to vector<8x32xf32>
    %cst_91 = arith.constant dense<0.000000e+00> : vector<8x3xf32>
    %209 = tpu.matmul %208, %3, %cst_91 {dimension_numbers = #tpu.dot_dimension_numbers<[1], [0], [0], [1], [0, 0, 1, 1], [], []>} : vector<8x32xf32>, vector<32x3xf32>, vector<8x3xf32> -> vector<8x3xf32>
    %210 = vector.broadcast %4 : vector<1x3xf32> to vector<8x3xf32>
    %211 = arith.addf %209, %210 : vector<8x3xf32>
    %c1_92 = arith.constant 1 : index
    %c0_93 = arith.constant 0 : index
    %c0_94 = arith.constant 0 : index
    %212 = vector.load %arg6[%c1_92, %c0_93, %c0_94] : memref<2x8x3xf32, #tpu.memory_space<vmem>>, vector<1x8x3xf32>
    %213 = vector.shape_cast %212 : vector<1x8x3xf32> to vector<8x3xf32>
    %214 = vector.shape_cast %211 : vector<8x3xf32> to vector<1x8x3xf32>
    tpu.vector_store %arg6[%c1_92, %c0_93, %c0_94], %214 {strides = array<i32>} : memref<2x8x3xf32, #tpu.memory_space<vmem>>, vector<1x8x3xf32>,
    return
  }
}

</mosaic_0001>

<bundles_post_ra>
// kernel: tpu_custom_call.1
= control target key start
LH: loop header
LB: loop body
LE: loop exit
PB: predicated region body
PF: predicated region fallthrough
CT: control target
= control target key end

     0   :  { %vm45_vm0 = vcmask 1043456   ;;  %v1835_v0 = vmov 0.0   ;;  %vm41_vm1 = vcmask 31744   ;;  %vm1836_vm2 = vmmov 0   ;;  %s1837_s10 = smov 64   ;;  %s2185_s1 = inlined_call_operand.vmem [shape: f32[4,128], index: 1, kind: input, shape index: {}]   ;;  %s2186_s0 = inlined_call_operand.vmem [shape: f32[2,8,4], index: 0, kind: input, shape index: {}]   ;;  %s2187_s2 = inlined_call_operand.vmem [shape: f32[32,128], index: 2, kind: input, shape index: {}]   ;;  %s2188_s3 = inlined_call_operand.vmem [shape: f32[1,128], index: 3, kind: input, shape index: {}]   ;;  %s2189_s4 = inlined_call_operand.vmem [shape: f32[32,3], index: 4, kind: input, shape index: {}]   ;;  %s2190_s5 = inlined_call_operand.vmem [shape: f32[1,3], index: 5, kind: input, shape index: {}]   ;;  %s2191_s6 = inlined_call_operand.vmem [shape: f32[2,8,3], index: 6, kind: output, shape index: {}]  }
   0x1   :  { %1583 = vmatprep.subr.mxu0 %v1835_v0  ;;  %1588 = vmatprep.subr.mxu1 %v1835_v0  ;;  %v23_v1 = vld [vmem:[%s2185_s1] sm:$0xf]  ;;  %v1499_v3 = vld [vmem:[%s2186_s0 + $0x8] sm:$0xff]  ;;  %v1892_v4 = vld [vmem:[%s2187_s2 + $0x18] sm:$0xff]  ;;  %vm341_vm3 = vcmask 1041409   ;;  %vm199_vm4 = vcmask 261120  }
   0x2   :  { %v34_v2 = vld [vmem:[%s2186_s0] sm:$0xff]  ;;  %1584 = vmatpush3.msk.msra.mxu0 %vm45_vm0, %v23_v1  ;;  %1585 = vmatprep.mubr.msk.f32.mxu0 %vm1836_vm2, %v1835_v0  ;;  %v1898_v5 = vld [vmem:[%s2187_s2 + $0x10] sm:$0xff]  ;;  %v1908_v6 = vld [vmem:[%s2187_s2 + $0x8] sm:$0xff]  ;;  %vm335_vm5 = vcmask 253952   ;;  %vm1413_vm6 = vcmask 23552  }
   0x3   :  { %1589 = vmatpush3.msk.msra.mxu1 %vm45_vm0, %v23_v1  ;;  %1590 = vmatprep.mubr.msk.f32.mxu1 %vm1836_vm2, %v1835_v0  ;;  %v1917_v7 = vld [vmem:[%s2187_s2] sm:$0xff] }
   0x4   :  { %1586 = vmatmul.mubr.msk.f32.vlgmr.msra.gmra.mxu0 %vm41_vm1, %v34_v2  ;;  %1591 = vmatmul.mubr.msk.f32.vlgmr.msra.gmra.mxu1 %vm41_vm1, %v1499_v3  ;;  %v1496_v8 = vld [vmem:[%s2188_s3] ss:$0 sm:$0xff]  ;;  %s1838_s3 = smov 32  }
   0x5   :  { %1593 = vmatprep.subr.mxu0 %v1835_v0  ;;  %1601 = vmatprep.mubr.msk.f32.mxu0 %vm1836_vm2, %v1835_v0 }
   0x6   :  { %1594 = vmatpush3.msra.mxu0 %v1892_v4  ;;  %1604 = vmatprep.subr.mxu1 %v1835_v0 }
   0x7   :  { %1595 = vmatprep.subr.mxu0 %v1835_v0  ;;  %1605 = vmatpush3.msra.mxu1 %v1892_v4 }
   0x8   :  { %1596 = vmatpush3.msra.mxu0 %v1898_v5  ;;  %1606 = vmatprep.subr.mxu1 %v1835_v0 }
   0x9   :  { %1597 = vmatprep.subr.mxu0 %v1835_v0  ;;  %1607 = vmatpush3.msra.mxu1 %v1898_v5 }
   0xa   :  { %1598 = vmatpush3.msra.mxu0 %v1908_v6  ;;  %1608 = vmatprep.subr.mxu1 %v1835_v0 }
   0xb   :  { %1599 = vmatprep.subr.mxu0 %v1835_v0  ;;  %1609 = vmatpush3.msra.mxu1 %v1908_v6 }
   0xc   :  { %1600 = vmatpush3.msra.mxu0 %v1917_v7  ;;  %1610 = vmatprep.subr.mxu1 %v1835_v0 }
   0xd   :  { %1602 = vmatmul.mubr.f32.vlgmr.msra.gmra.mxu0 %v1835_v0  ;;  %1611 = vmatpush3.msra.mxu1 %v1917_v7 }
   0xe   :  { %1612 = vmatprep.mubr.msk.f32.mxu1 %vm1836_vm2, %v1835_v0  ;;  %1615 = vmatprep.subr.mxu0 %v1835_v0 }
   0xf   :  { %1616 = vmatpush3.msra.mxu0 %v1892_v4  ;;  %1623 = vmatprep.mubr.msk.f32.mxu0 %vm1836_vm2, %v1835_v0 }
  0x10   :  { %1617 = vmatprep.subr.mxu0 %v1835_v0  ;;  %1626 = vmatprep.subr.mxu1 %v1835_v0 }
  0x11   :  { %1618 = vmatpush3.msra.mxu0 %v1898_v5 }
  0x12   :  { %1619 = vmatprep.subr.mxu0 %v1835_v0 }
  0x13   :  { %1620 = vmatpush3.msra.mxu0 %v1908_v6 }
  0x14   :  { %1621 = vmatprep.subr.mxu0 %v1835_v0 }
  0x15   :  { %1622 = vmatpush3.msra.mxu0 %v1917_v7 }
  0x16   :  { %1637 = vmatprep.subr.mxu0 %v1835_v0 }
  0xc4   :  { %v115_v9 = vpop.f32.mrf.mxu0  ;;  %v191_v10 = vpop.f32.mrf.mxu1 }
  0xc5   :  { %v116_v11 = vadd.f32 %v1496_v8, %v115_v9  ;;  %v192_v12 = vadd.f32 %v1496_v8, %v191_v10 }
  0xc6   :  { %v1587_v13 = vpop.f32.mrf.mxu0  ;;  %v1592_v14 = vpop.f32.mrf.mxu1 }
  0xc7   :  { %119 = vst [vmem:[#allocation2] sm:$0xff] %v116_v11  ;;  %196 = vst [vmem:[#allocation2 + $0x8] sm:$0xff] %v192_v12 }
  0xcd   :  { %v269_v15 = vpop.f32.mrf.mxu0 }
  0xce   :  { %v198_v16 = vld [vmem:[#allocation2 + $0x8] sm:$0x1]  ;;  %v274_v17 = vrot.slane %v269_v15, 1  ;;  %v197_v18 = vld [vmem:[#allocation2] sm:$0x1] }
  0xcf   :  { %v1603_v19 = vpop.f32.mrf.mxu0  ;;  %v277_v21 = vadd.f32 %v269_v15, %v197_v18  ;;  %v338_v51 = vld [vmem:[#allocation2 + $0x1] sm:$0x1]  ;;  %v339_v55 = vld [vmem:[#allocation2 + $0x9] sm:$0x1] }
  0xd0   :  { %v278_v20 = vadd.f32 %v274_v17, %v198_v16 }
  0xd1   :  { %v1502_v25 = vmul.f32 -1.442695, %v277_v21 }
  0xd2   :  { %1707 = vtanh.f32 %v278_v20  ;;  %v1503_v24 = vmul.f32 -1.442695, %v278_v20 }
  0xd3   :  { %1709 = vtanh.f32 %v277_v21 }
  0xd4   :  { %1711 = vpow2.f32 %v1503_v24 }
  0xd5   :  { %1713 = vpow2.f32 %v1502_v25 }
  0xdf   :  { %v1708_v22 = vpop.eup %1707 }
  0xe0   :  { %299 = vrot.lane.b32.xlu0 %v1708_v22, %s1837_s10  ;;  %v1710_v23 = vpop.eup %1709 }
  0xe1   :  { %v1712_v26 = vpop.eup %1711 }
  0xe2   :  { %v286_v27 = vadd.f32 1.0, %v1712_v26  ;;  %v1714_v28 = vpop.eup %1713 }
  0xe3   :  { %v285_v29 = vadd.f32 1.0, %v1714_v28  ;;  %v481_v28 = vld [vmem:[#allocation2 + $0x2] sm:$0x1] }
  0xe4   :  { %297 = vrot.lane.b32.xlu0 %v1710_v23, %s1837_s10  ;;  %1715 = vrcp.f32 %v286_v27 }
  0xe5   :  { %1717 = vrcp.f32 %v285_v29 }
  0xf1   :  { %v1716_v30 = vpop.eup %1715 }
  0xf2   :  { %v1718_v33 = vpop.eup %1717  ;;  %v294_v36 = vmul.f32 0.0, %v1716_v30 }
  0xf3   :  { %v293_v39 = vmul.f32 0.0, %v1718_v33 }
 0x152   :  { %v300_v31 = vpop.permute.xlu0 %299 }
 0x153   :  { %v304_v32 = vmul.f32 %v1716_v30, %v300_v31 }
 0x155   :  { %309 = vrot.lane.b32.xlu1 %v304_v32, %s1838_s3  ;;  %v482_v32 = vld [vmem:[#allocation2 + $0xa] sm:$0x1] }
 0x156   :  { %v298_v34 = vpop.permute.xlu0 %297 }
 0x157   :  { %v303_v35 = vmul.f32 %v1718_v33, %v298_v34 }
 0x159   :  { %307 = vrot.lane.b32.xlu1 %v303_v35, %s1838_s3 }
 0x1c7   :  { %v310_v37 = vpop.permute.xlu1 %309 }
 0x1c8   :  { %v1949_v38 = vadd.f32 %v310_v37, %v294_v36 }
 0x1ca   :  { %1719 = vtanh.f32 %v1949_v38 }
 0x1cb   :  { %v308_v40 = vpop.permute.xlu1 %307 }
 0x1cc   :  { %v313_v41 = vadd.f32 %v308_v40, %v293_v39 }
 0x1ce   :  { %1721 = vtanh.f32 %v313_v41 }
 0x1d7   :  { %v1720_v42 = vpop.eup %1719 }
 0x1d8   :  { %321 = vrot.lane.b32.xlu0 %v1720_v42, %s1837_s10 }
 0x1db   :  { %v1722_v43 = vpop.eup %1721 }
 0x1dc   :  { %319 = vrot.lane.b32.xlu1 %v1722_v43, %s1837_s10 }
 0x24a   :  { %v322_v44 = vpop.permute.xlu0 %321 }
 0x24b   :  { %v1954_v45 = vmul.f32 %v1716_v30, %v322_v44 }
 0x24d   :  { %v340_v47 = vrot.slane %v1954_v45, 7 }
 0x24e   :  { %v320_v46 = vpop.permute.xlu1 %319 }
 0x24f   :  { %v1957_v48 = vmul.f32 %v1718_v33, %v320_v46 }
 0x251   :  { %v342_v49 = vsel %vm341_vm3, %v340_v47, %v1957_v48 }
 0x252   :  { %343 = vrot.lane.b32.xlu0 %v342_v49, %s1838_s3 }
 0x2c4   :  { %v344_v50 = vpop.permute.xlu0 %343 }
 0x2c5   :  { %1613 = vmatmul.mubr.msk.f32.vlgmr.msra.gmra.mxu1 %vm199_vm4, %v344_v50 }
 0x2c6   :  { %1627 = vmatpush3.msra.mxu1 %v1892_v4  ;;  %1634 = vmatprep.mubr.msk.f32.mxu1 %vm1836_vm2, %v1835_v0 }
 0x2c7   :  { %1628 = vmatprep.subr.mxu1 %v1835_v0 }
 0x2c8   :  { %1629 = vmatpush3.msra.mxu1 %v1898_v5 }
 0x2c9   :  { %1630 = vmatprep.subr.mxu1 %v1835_v0 }
 0x2ca   :  { %1631 = vmatpush3.msra.mxu1 %v1908_v6 }
 0x2cb   :  { %1632 = vmatprep.subr.mxu1 %v1835_v0 }
 0x2cc   :  { %1633 = vmatpush3.msra.mxu1 %v1917_v7 }
 0x2cd   :  { %1648 = vmatprep.subr.mxu1 %v1835_v0 }
 0x385   :  { %v413_v52 = vpop.f32.mrf.mxu1 }
 0x386   :  { %v418_v53 = vrot.slane %v413_v52, 1  ;;  %v421_v54 = vadd.f32 %v413_v52, %v338_v51 }
 0x387   :  { %v1614_v56 = vpop.f32.mrf.mxu1 }
 0x388   :  { %v422_v57 = vadd.f32 %v418_v53, %v339_v55  ;;  %1723 = vtanh.f32 %v421_v54  ;;  %v1505_v60 = vmul.f32 -1.442695, %v421_v54 }
 0x38a   :  { %1725 = vtanh.f32 %v422_v57  ;;  %v1506_v61 = vmul.f32 -1.442695, %v422_v57 }
 0x38b   :  { %1727 = vpow2.f32 %v1505_v60 }
 0x38c   :  { %1729 = vpow2.f32 %v1506_v61 }
 0x395   :  { %v1724_v58 = vpop.eup %1723 }
 0x396   :  { %441 = vrot.lane.b32.xlu0 %v1724_v58, %s1837_s10 }
 0x397   :  { %v1726_v59 = vpop.eup %1725 }
 0x398   :  { %443 = vrot.lane.b32.xlu1 %v1726_v59, %s1837_s10  ;;  %v1728_v62 = vpop.eup %1727 }
 0x399   :  { %v1730_v63 = vpop.eup %1729  ;;  %v429_v1 = vadd.f32 1.0, %v1728_v62 }
 0x39a   :  { %v430_v2 = vadd.f32 1.0, %v1730_v63 }
 0x39b   :  { %1731 = vrcp.f32 %v429_v1 }
 0x39c   :  { %1733 = vrcp.f32 %v430_v2 }
 0x3a8   :  { %v1732_v3 = vpop.eup %1731 }
 0x3a9   :  { %v1734_v10 = vpop.eup %1733  ;;  %v437_v13 = vmul.f32 %v1732_v3, %v313_v41 }
 0x3aa   :  { %v438_v16 = vmul.f32 %v1734_v10, %v1949_v38 }
 0x408   :  { %v442_v8 = vpop.permute.xlu0 %441 }
 0x409   :  { %v447_v9 = vmul.f32 %v1732_v3, %v442_v8 }
 0x40a   :  { %v444_v11 = vpop.permute.xlu1 %443 }
 0x40b   :  { %451 = vrot.lane.b32.xlu0 %v447_v9, %s1838_s3  ;;  %v448_v12 = vmul.f32 %v1734_v10, %v444_v11  ;;  %v624_v11 = vld [vmem:[#allocation2 + $0xb] sm:$0x1] }
 0x40d   :  { %453 = vrot.lane.b32.xlu1 %v448_v12, %s1838_s3 }
 0x47d   :  { %v452_v14 = vpop.permute.xlu0 %451 }
 0x47e   :  { %v457_v15 = vadd.f32 %v452_v14, %v437_v13 }
 0x47f   :  { %v454_v17 = vpop.permute.xlu1 %453 }
 0x480   :  { %1735 = vtanh.f32 %v457_v15  ;;  %v458_v18 = vadd.f32 %v454_v17, %v438_v16 }
 0x482   :  { %1737 = vtanh.f32 %v458_v18 }
 0x48d   :  { %v1736_v19 = vpop.eup %1735 }
 0x48e   :  { %463 = vrot.lane.b32.xlu0 %v1736_v19, %s1837_s10 }
 0x48f   :  { %v1738_v20 = vpop.eup %1737 }
 0x490   :  { %465 = vrot.lane.b32.xlu1 %v1738_v20, %s1837_s10 }
 0x500   :  { %v464_v21 = vpop.permute.xlu0 %463 }
 0x501   :  { %v1982_v24 = vmul.f32 %v1732_v3, %v464_v21  ;;  %v623_v3 = vld [vmem:[#allocation2 + $0x3] sm:$0x1] }
 0x502   :  { %v466_v22 = vpop.permute.xlu1 %465 }
 0x503   :  { %v1980_v23 = vmul.f32 %v1734_v10, %v466_v22 }
 0x505   :  { %v483_v25 = vrot.slane %v1980_v23, 7 }
 0x507   :  { %v484_v26 = vsel %vm341_vm3, %v483_v25, %v1982_v24 }
 0x508   :  { %485 = vrot.lane.b32.xlu1 %v484_v26, %s1838_s3 }
 0x57a   :  { %v486_v27 = vpop.permute.xlu1 %485 }
 0x57b   :  { %1624 = vmatmul.mubr.msk.f32.vlgmr.msra.gmra.mxu0 %vm199_vm4, %v486_v27 }
 0x57c   :  { %1638 = vmatpush3.msra.mxu0 %v1892_v4  ;;  %1645 = vmatprep.mubr.msk.f32.mxu0 %vm1836_vm2, %v1835_v0 }
 0x57d   :  { %1639 = vmatprep.subr.mxu0 %v1835_v0 }
 0x57e   :  { %1640 = vmatpush3.msra.mxu0 %v1898_v5 }
 0x57f   :  { %1641 = vmatprep.subr.mxu0 %v1835_v0 }
 0x580   :  { %1642 = vmatpush3.msra.mxu0 %v1908_v6 }
 0x581   :  { %1643 = vmatprep.subr.mxu0 %v1835_v0 }
 0x582   :  { %1644 = vmatpush3.msra.mxu0 %v1917_v7 }
 0x583   :  { %1659 = vmatprep.subr.mxu0 %v1835_v0 }
 0x63b   :  { %v555_v29 = vpop.f32.mrf.mxu0 }
 0x63c   :  { %v560_v30 = vrot.slane %v555_v29, 1  ;;  %v563_v31 = vadd.f32 %v555_v29, %v481_v28 }
 0x63d   :  { %v1625_v33 = vpop.f32.mrf.mxu0 }
 0x63e   :  { %v564_v34 = vadd.f32 %v560_v30, %v482_v32  ;;  %1739 = vtanh.f32 %v563_v31  ;;  %v1508_v37 = vmul.f32 -1.442695, %v563_v31 }
 0x640   :  { %1741 = vtanh.f32 %v564_v34  ;;  %v1509_v38 = vmul.f32 -1.442695, %v564_v34 }
 0x641   :  { %1743 = vpow2.f32 %v1508_v37 }
 0x642   :  { %1745 = vpow2.f32 %v1509_v38 }
 0x64b   :  { %v1740_v35 = vpop.eup %1739 }
 0x64c   :  { %583 = vrot.lane.b32.xlu1 %v1740_v35, %s1837_s10 }
 0x64d   :  { %v1742_v36 = vpop.eup %1741 }
 0x64e   :  { %585 = vrot.lane.b32.xlu0 %v1742_v36, %s1837_s10  ;;  %v1744_v39 = vpop.eup %1743 }
 0x64f   :  { %v1746_v40 = vpop.eup %1745  ;;  %v571_v41 = vadd.f32 1.0, %v1744_v39 }
 0x650   :  { %v572_v42 = vadd.f32 1.0, %v1746_v40 }
 0x651   :  { %1747 = vrcp.f32 %v571_v41 }
 0x652   :  { %1749 = vrcp.f32 %v572_v42 }
 0x65e   :  { %v1748_v43 = vpop.eup %1747 }
 0x65f   :  { %v1750_v47 = vpop.eup %1749  ;;  %v579_v51 = vmul.f32 %v1748_v43, %v457_v15 }
 0x660   :  { %v580_v54 = vmul.f32 %v1750_v47, %v458_v18 }
 0x6be   :  { %v584_v44 = vpop.permute.xlu1 %583 }
 0x6bf   :  { %v589_v46 = vmul.f32 %v1748_v43, %v584_v44 }
 0x6c0   :  { %v586_v49 = vpop.permute.xlu0 %585 }
 0x6c1   :  { %593 = vrot.lane.b32.xlu1 %v589_v46, %s1838_s3  ;;  %v590_v50 = vmul.f32 %v1750_v47, %v586_v49  ;;  %v765_v46 = vld [vmem:[#allocation2 + $0x4] sm:$0x1] }
 0x6c3   :  { %595 = vrot.lane.b32.xlu0 %v590_v50, %s1838_s3 }
 0x733   :  { %v594_v52 = vpop.permute.xlu1 %593 }
 0x734   :  { %v599_v53 = vadd.f32 %v594_v52, %v579_v51  ;;  %v766_v51 = vld [vmem:[#allocation2 + $0xc] sm:$0x1] }
 0x735   :  { %v596_v55 = vpop.permute.xlu0 %595 }
 0x736   :  { %1751 = vtanh.f32 %v599_v53  ;;  %v600_v56 = vadd.f32 %v596_v55, %v580_v54 }
 0x738   :  { %1753 = vtanh.f32 %v600_v56 }
 0x743   :  { %v1752_v57 = vpop.eup %1751 }
 0x744   :  { %605 = vrot.lane.b32.xlu1 %v1752_v57, %s1837_s10 }
 0x745   :  { %v1754_v58 = vpop.eup %1753 }
 0x746   :  { %607 = vrot.lane.b32.xlu0 %v1754_v58, %s1837_s10 }
 0x7b6   :  { %v606_v59 = vpop.permute.xlu1 %605 }
 0x7b7   :  { %v2007_v62 = vmul.f32 %v1748_v43, %v606_v59 }
 0x7b8   :  { %v608_v60 = vpop.permute.xlu0 %607 }
 0x7b9   :  { %v2005_v61 = vmul.f32 %v1750_v47, %v608_v60 }
 0x7bb   :  { %v625_v63 = vrot.slane %v2005_v61, 7 }
 0x7bd   :  { %v626_v1 = vsel %vm341_vm3, %v625_v63, %v2007_v62 }
 0x7be   :  { %627 = vrot.lane.b32.xlu0 %v626_v1, %s1838_s3 }
 0x830   :  { %v628_v2 = vpop.permute.xlu0 %627 }
 0x831   :  { %1635 = vmatmul.mubr.msk.f32.vlgmr.msra.gmra.mxu1 %vm199_vm4, %v628_v2 }
 0x832   :  { %1649 = vmatpush3.msra.mxu1 %v1892_v4  ;;  %1656 = vmatprep.mubr.msk.f32.mxu1 %vm1836_vm2, %v1835_v0 }
 0x833   :  { %1650 = vmatprep.subr.mxu1 %v1835_v0 }
 0x834   :  { %1651 = vmatpush3.msra.mxu1 %v1898_v5 }
 0x835   :  { %1652 = vmatprep.subr.mxu1 %v1835_v0 }
 0x836   :  { %1653 = vmatpush3.msra.mxu1 %v1908_v6 }
 0x837   :  { %1654 = vmatprep.subr.mxu1 %v1835_v0 }
 0x838   :  { %1655 = vmatpush3.msra.mxu1 %v1917_v7 }
 0x839   :  { %1670 = vmatprep.subr.mxu1 %v1835_v0 }
 0x8f1   :  { %v697_v8 = vpop.f32.mrf.mxu1 }
 0x8f2   :  { %v702_v9 = vrot.slane %v697_v8, 1  ;;  %v705_v10 = vadd.f32 %v697_v8, %v623_v3 }
 0x8f3   :  { %v1636_v12 = vpop.f32.mrf.mxu1 }
 0x8f4   :  { %v706_v13 = vadd.f32 %v702_v9, %v624_v11  ;;  %1755 = vtanh.f32 %v705_v10  ;;  %v1511_v16 = vmul.f32 -1.442695, %v705_v10 }
 0x8f6   :  { %1757 = vtanh.f32 %v706_v13  ;;  %v1512_v17 = vmul.f32 -1.442695, %v706_v13 }
 0x8f7   :  { %1759 = vpow2.f32 %v1511_v16 }
 0x8f8   :  { %1761 = vpow2.f32 %v1512_v17 }
 0x901   :  { %v1756_v14 = vpop.eup %1755 }
 0x902   :  { %725 = vrot.lane.b32.xlu0 %v1756_v14, %s1837_s10 }
 0x903   :  { %v1758_v15 = vpop.eup %1757 }
 0x904   :  { %727 = vrot.lane.b32.xlu1 %v1758_v15, %s1837_s10  ;;  %v1760_v18 = vpop.eup %1759 }
 0x905   :  { %v1762_v19 = vpop.eup %1761  ;;  %v713_v20 = vadd.f32 1.0, %v1760_v18 }
 0x906   :  { %v714_v21 = vadd.f32 1.0, %v1762_v19 }
 0x907   :  { %1763 = vrcp.f32 %v713_v20 }
 0x908   :  { %1765 = vrcp.f32 %v714_v21 }
 0x914   :  { %v1764_v22 = vpop.eup %1763 }
 0x915   :  { %v1766_v27 = vpop.eup %1765  ;;  %v721_v30 = vmul.f32 %v1764_v22, %v599_v53 }
 0x916   :  { %v722_v33 = vmul.f32 %v1766_v27, %v600_v56 }
 0x974   :  { %v726_v25 = vpop.permute.xlu0 %725 }
 0x975   :  { %v731_v26 = vmul.f32 %v1764_v22, %v726_v25 }
 0x976   :  { %v728_v28 = vpop.permute.xlu1 %727 }
 0x977   :  { %735 = vrot.lane.b32.xlu0 %v731_v26, %s1838_s3  ;;  %v732_v29 = vmul.f32 %v1766_v27, %v728_v28  ;;  %v907_v28 = vld [vmem:[#allocation2 + $0x5] sm:$0x1] }
 0x979   :  { %737 = vrot.lane.b32.xlu1 %v732_v29, %s1838_s3 }
 0x9e9   :  { %v736_v31 = vpop.permute.xlu0 %735 }
 0x9ea   :  { %v741_v32 = vadd.f32 %v736_v31, %v721_v30  ;;  %v908_v31 = vld [vmem:[#allocation2 + $0xd] sm:$0x1] }
 0x9eb   :  { %v738_v34 = vpop.permute.xlu1 %737 }
 0x9ec   :  { %1767 = vtanh.f32 %v741_v32  ;;  %v742_v35 = vadd.f32 %v738_v34, %v722_v33 }
 0x9ee   :  { %1769 = vtanh.f32 %v742_v35 }
 0x9f9   :  { %v1768_v36 = vpop.eup %1767 }
 0x9fa   :  { %747 = vrot.lane.b32.xlu0 %v1768_v36, %s1837_s10 }
 0x9fb   :  { %v1770_v37 = vpop.eup %1769 }
 0x9fc   :  { %749 = vrot.lane.b32.xlu1 %v1770_v37, %s1837_s10 }
 0xa6c   :  { %v748_v38 = vpop.permute.xlu0 %747 }
 0xa6d   :  { %v2032_v41 = vmul.f32 %v1764_v22, %v748_v38 }
 0xa6e   :  { %v750_v39 = vpop.permute.xlu1 %749 }
 0xa6f   :  { %v2030_v40 = vmul.f32 %v1766_v27, %v750_v39 }
 0xa71   :  { %v767_v42 = vrot.slane %v2030_v40, 7 }
 0xa73   :  { %v768_v43 = vsel %vm341_vm3, %v767_v42, %v2032_v41 }
 0xa74   :  { %769 = vrot.lane.b32.xlu1 %v768_v43, %s1838_s3 }
 0xae6   :  { %v770_v44 = vpop.permute.xlu1 %769 }
 0xae7   :  { %1646 = vmatmul.mubr.msk.f32.vlgmr.msra.gmra.mxu0 %vm199_vm4, %v770_v44 }
 0xae8   :  { %1660 = vmatpush3.msra.mxu0 %v1892_v4  ;;  %1667 = vmatprep.mubr.msk.f32.mxu0 %vm1836_vm2, %v1835_v0 }
 0xae9   :  { %1661 = vmatprep.subr.mxu0 %v1835_v0 }
 0xaea   :  { %1662 = vmatpush3.msra.mxu0 %v1898_v5 }
 0xaeb   :  { %1663 = vmatprep.subr.mxu0 %v1835_v0 }
 0xaec   :  { %1664 = vmatpush3.msra.mxu0 %v1908_v6 }
 0xaed   :  { %1665 = vmatprep.subr.mxu0 %v1835_v0 }
 0xaee   :  { %1666 = vmatpush3.msra.mxu0 %v1917_v7 }
 0xaef   :  { %1681 = vmatprep.subr.mxu0 %v1835_v0 }
 0xba7   :  { %v839_v47 = vpop.f32.mrf.mxu0 }
 0xba8   :  { %v844_v49 = vrot.slane %v839_v47, 1  ;;  %v847_v50 = vadd.f32 %v839_v47, %v765_v46 }
 0xba9   :  { %v1647_v52 = vpop.f32.mrf.mxu0 }
 0xbaa   :  { %v848_v53 = vadd.f32 %v844_v49, %v766_v51  ;;  %1771 = vtanh.f32 %v847_v50  ;;  %v1514_v56 = vmul.f32 -1.442695, %v847_v50 }
 0xbac   :  { %1773 = vtanh.f32 %v848_v53  ;;  %v1515_v57 = vmul.f32 -1.442695, %v848_v53 }
 0xbad   :  { %1775 = vpow2.f32 %v1514_v56 }
 0xbae   :  { %1777 = vpow2.f32 %v1515_v57 }
 0xbb7   :  { %v1772_v54 = vpop.eup %1771 }
 0xbb8   :  { %867 = vrot.lane.b32.xlu1 %v1772_v54, %s1837_s10 }
 0xbb9   :  { %v1774_v55 = vpop.eup %1773 }
 0xbba   :  { %869 = vrot.lane.b32.xlu0 %v1774_v55, %s1837_s10  ;;  %v1776_v58 = vpop.eup %1775 }
 0xbbb   :  { %v1778_v59 = vpop.eup %1777  ;;  %v855_v60 = vadd.f32 1.0, %v1776_v58 }
 0xbbc   :  { %v856_v63 = vadd.f32 1.0, %v1778_v59 }
 0xbbd   :  { %1779 = vrcp.f32 %v855_v60 }
 0xbbe   :  { %1781 = vrcp.f32 %v856_v63 }
 0xbca   :  { %v1780_v1 = vpop.eup %1779 }
 0xbcb   :  { %v1782_v8 = vpop.eup %1781  ;;  %v863_v11 = vmul.f32 %v1780_v1, %v741_v32 }
 0xbcc   :  { %v864_v14 = vmul.f32 %v1782_v8, %v742_v35 }
 0xc2a   :  { %v868_v2 = vpop.permute.xlu1 %867 }
 0xc2b   :  { %v873_v3 = vmul.f32 %v1780_v1, %v868_v2 }
 0xc2c   :  { %v870_v9 = vpop.permute.xlu0 %869 }
 0xc2d   :  { %877 = vrot.lane.b32.xlu1 %v873_v3, %s1838_s3  ;;  %v874_v10 = vmul.f32 %v1782_v8, %v870_v9  ;;  %v1049_v3 = vld [vmem:[#allocation2 + $0x6] sm:$0x1] }
 0xc2f   :  { %879 = vrot.lane.b32.xlu0 %v874_v10, %s1838_s3 }
 0xc9f   :  { %v878_v12 = vpop.permute.xlu1 %877 }
 0xca0   :  { %v883_v13 = vadd.f32 %v878_v12, %v863_v11  ;;  %v1050_v11 = vld [vmem:[#allocation2 + $0xe] sm:$0x1] }
 0xca1   :  { %v880_v15 = vpop.permute.xlu0 %879 }
 0xca2   :  { %1783 = vtanh.f32 %v883_v13  ;;  %v884_v16 = vadd.f32 %v880_v15, %v864_v14 }
 0xca4   :  { %1785 = vtanh.f32 %v884_v16 }
 0xcaf   :  { %v1784_v17 = vpop.eup %1783 }
 0xcb0   :  { %889 = vrot.lane.b32.xlu1 %v1784_v17, %s1837_s10 }
 0xcb1   :  { %v1786_v18 = vpop.eup %1785 }
 0xcb2   :  { %891 = vrot.lane.b32.xlu0 %v1786_v18, %s1837_s10 }
 0xd22   :  { %v890_v19 = vpop.permute.xlu1 %889 }
 0xd23   :  { %v2057_v22 = vmul.f32 %v1780_v1, %v890_v19 }
 0xd24   :  { %v892_v20 = vpop.permute.xlu0 %891 }
 0xd25   :  { %v2055_v21 = vmul.f32 %v1782_v8, %v892_v20 }
 0xd27   :  { %v909_v25 = vrot.slane %v2055_v21, 7 }
 0xd29   :  { %v910_v26 = vsel %vm341_vm3, %v909_v25, %v2057_v22 }
 0xd2a   :  { %911 = vrot.lane.b32.xlu0 %v910_v26, %s1838_s3 }
 0xd9c   :  { %v912_v27 = vpop.permute.xlu0 %911 }
 0xd9d   :  { %1657 = vmatmul.mubr.msk.f32.vlgmr.msra.gmra.mxu1 %vm199_vm4, %v912_v27 }
 0xd9e   :  { %1671 = vmatpush3.msra.mxu1 %v1892_v4  ;;  %1678 = vmatprep.mubr.msk.f32.mxu1 %vm1836_vm2, %v1835_v0 }
 0xd9f   :  { %1672 = vmatprep.subr.mxu1 %v1835_v0 }
 0xda0   :  { %1673 = vmatpush3.msra.mxu1 %v1898_v5 }
 0xda1   :  { %1674 = vmatprep.subr.mxu1 %v1835_v0 }
 0xda2   :  { %1675 = vmatpush3.msra.mxu1 %v1908_v6 }
 0xda3   :  { %1676 = vmatprep.subr.mxu1 %v1835_v0 }
 0xda4   :  { %1677 = vmatpush3.msra.mxu1 %v1917_v7 }
 0xda5   :  { %1692 = vmatprep.subr.mxu1 %v1835_v0 }
 0xe5d   :  { %v981_v29 = vpop.f32.mrf.mxu1 }
 0xe5e   :  { %v986_v4 = vrot.slane %v981_v29, 1  ;;  %v989_v30 = vadd.f32 %v981_v29, %v907_v28 }
 0xe5f   :  { %v1658_v32 = vpop.f32.mrf.mxu1 }
 0xe60   :  { %v990_v33 = vadd.f32 %v986_v4, %v908_v31  ;;  %1787 = vtanh.f32 %v989_v30  ;;  %v1517_v6 = vmul.f32 -1.442695, %v989_v30 }
 0xe62   :  { %1789 = vtanh.f32 %v990_v33  ;;  %v1518_v35 = vmul.f32 -1.442695, %v990_v33 }
 0xe63   :  { %1791 = vpow2.f32 %v1517_v6 }
 0xe64   :  { %1793 = vpow2.f32 %v1518_v35 }
 0xe6d   :  { %v1788_v5 = vpop.eup %1787 }
 0xe6e   :  { %1009 = vrot.lane.b32.xlu0 %v1788_v5, %s1837_s10 }
 0xe6f   :  { %v1790_v34 = vpop.eup %1789 }
 0xe70   :  { %1011 = vrot.lane.b32.xlu1 %v1790_v34, %s1837_s10  ;;  %v1792_v7 = vpop.eup %1791 }
 0xe71   :  { %v1794_v36 = vpop.eup %1793  ;;  %v997_v37 = vadd.f32 1.0, %v1792_v7 }
 0xe72   :  { %v998_v38 = vadd.f32 1.0, %v1794_v36 }
 0xe73   :  { %1795 = vrcp.f32 %v997_v37 }
 0xe74   :  { %1797 = vrcp.f32 %v998_v38 }
 0xe80   :  { %v1796_v39 = vpop.eup %1795 }
 0xe81   :  { %v1798_v44 = vpop.eup %1797  ;;  %v1005_v49 = vmul.f32 %v1796_v39, %v883_v13 }
 0xe82   :  { %v1006_v52 = vmul.f32 %v1798_v44, %v884_v16 }
 0xee0   :  { %v1010_v42 = vpop.permute.xlu0 %1009 }
 0xee1   :  { %v1015_v43 = vmul.f32 %v1796_v39, %v1010_v42 }
 0xee2   :  { %v1012_v46 = vpop.permute.xlu1 %1011 }
 0xee3   :  { %1019 = vrot.lane.b32.xlu0 %v1015_v43, %s1838_s3  ;;  %v1016_v47 = vmul.f32 %v1798_v44, %v1012_v46  ;;  %v1191_v46 = vld [vmem:[#allocation2 + $0x7] sm:$0x1] }
 0xee5   :  { %1021 = vrot.lane.b32.xlu1 %v1016_v47, %s1838_s3 }
 0xf55   :  { %v1020_v50 = vpop.permute.xlu0 %1019 }
 0xf56   :  { %v1025_v51 = vadd.f32 %v1020_v50, %v1005_v49 }
 0xf57   :  { %v1022_v53 = vpop.permute.xlu1 %1021 }
 0xf58   :  { %1799 = vtanh.f32 %v1025_v51  ;;  %v1026_v54 = vadd.f32 %v1022_v53, %v1006_v52 }
 0xf5a   :  { %1801 = vtanh.f32 %v1026_v54 }
 0xf65   :  { %v1800_v55 = vpop.eup %1799 }
 0xf66   :  { %1031 = vrot.lane.b32.xlu0 %v1800_v55, %s1837_s10 }
 0xf67   :  { %v1802_v56 = vpop.eup %1801 }
 0xf68   :  { %1033 = vrot.lane.b32.xlu1 %v1802_v56, %s1837_s10 }
 0xfd8   :  { %v1032_v57 = vpop.permute.xlu0 %1031 }
 0xfd9   :  { %v2082_v60 = vmul.f32 %v1796_v39, %v1032_v57 }
 0xfda   :  { %v1034_v58 = vpop.permute.xlu1 %1033 }
 0xfdb   :  { %v2080_v59 = vmul.f32 %v1798_v44, %v1034_v58 }
 0xfdd   :  { %v1051_v63 = vrot.slane %v2080_v59, 7 }
 0xfdf   :  { %v1052_v1 = vsel %vm341_vm3, %v1051_v63, %v2082_v60 }
 0xfe0   :  { %1053 = vrot.lane.b32.xlu1 %v1052_v1, %s1838_s3 }
0x1052   :  { %v1054_v2 = vpop.permute.xlu1 %1053 }
0x1053   :  { %1668 = vmatmul.mubr.msk.f32.vlgmr.msra.gmra.mxu0 %vm199_vm4, %v1054_v2 }
0x1054   :  { %1689 = vmatprep.mubr.msk.f32.mxu0 %vm1836_vm2, %v1835_v0 }
0x1113   :  { %v1123_v8 = vpop.f32.mrf.mxu0 }
0x1114   :  { %v1128_v9 = vrot.slane %v1123_v8, 1  ;;  %v1131_v10 = vadd.f32 %v1123_v8, %v1049_v3 }
0x1115   :  { %v1669_v12 = vpop.f32.mrf.mxu0 }
0x1116   :  { %v1132_v13 = vadd.f32 %v1128_v9, %v1050_v11  ;;  %1803 = vtanh.f32 %v1131_v10  ;;  %v1520_v16 = vmul.f32 -1.442695, %v1131_v10 }
0x1118   :  { %1805 = vtanh.f32 %v1132_v13  ;;  %v1521_v17 = vmul.f32 -1.442695, %v1132_v13 }
0x1119   :  { %1807 = vpow2.f32 %v1520_v16 }
0x111a   :  { %1809 = vpow2.f32 %v1521_v17 }
0x1123   :  { %v1804_v14 = vpop.eup %1803 }
0x1124   :  { %1151 = vrot.lane.b32.xlu1 %v1804_v14, %s1837_s10 }
0x1125   :  { %v1806_v15 = vpop.eup %1805 }
0x1126   :  { %1153 = vrot.lane.b32.xlu0 %v1806_v15, %s1837_s10  ;;  %v1808_v18 = vpop.eup %1807 }
0x1127   :  { %v1810_v19 = vpop.eup %1809  ;;  %v1139_v20 = vadd.f32 1.0, %v1808_v18 }
0x1128   :  { %v1140_v25 = vadd.f32 1.0, %v1810_v19 }
0x1129   :  { %1811 = vrcp.f32 %v1139_v20 }
0x112a   :  { %1813 = vrcp.f32 %v1140_v25 }
0x1136   :  { %v1812_v26 = vpop.eup %1811 }
0x1137   :  { %v1814_v29 = vpop.eup %1813  ;;  %v1147_v31 = vmul.f32 %v1812_v26, %v1025_v51  ;;  %v1192_v51 = vld [vmem:[#allocation2 + $0xf] sm:$0x1] }
0x1138   :  { %v1148_v5 = vmul.f32 %v1814_v29, %v1026_v54 }
0x1196   :  { %v1152_v27 = vpop.permute.xlu1 %1151 }
0x1197   :  { %v1157_v28 = vmul.f32 %v1812_v26, %v1152_v27 }
0x1198   :  { %v1154_v4 = vpop.permute.xlu0 %1153 }
0x1199   :  { %1161 = vrot.lane.b32.xlu1 %v1157_v28, %s1838_s3  ;;  %v1158_v30 = vmul.f32 %v1814_v29, %v1154_v4 }
0x119b   :  { %1163 = vrot.lane.b32.xlu0 %v1158_v30, %s1838_s3 }
0x120b   :  { %v1162_v32 = vpop.permute.xlu1 %1161 }
0x120c   :  { %v1167_v33 = vadd.f32 %v1162_v32, %v1147_v31 }
0x120d   :  { %v1164_v34 = vpop.permute.xlu0 %1163 }
0x120e   :  { %1815 = vtanh.f32 %v1167_v33  ;;  %v1168_v6 = vadd.f32 %v1164_v34, %v1148_v5 }
0x1210   :  { %1817 = vtanh.f32 %v1168_v6 }
0x121b   :  { %v1816_v35 = vpop.eup %1815 }
0x121c   :  { %1173 = vrot.lane.b32.xlu1 %v1816_v35, %s1837_s10  ;;  %v1525_v35 = vld [vmem:[%s2190_s5] ss:$0 sm:$0xff] }
0x121d   :  { %v1818_v7 = vpop.eup %1817 }
0x121e   :  { %1175 = vrot.lane.b32.xlu0 %v1818_v7, %s1837_s10 }
0x128e   :  { %v1174_v36 = vpop.permute.xlu1 %1173 }
0x128f   :  { %v1179_v39 = vmul.f32 %v1812_v26, %v1174_v36 }
0x1290   :  { %v1176_v37 = vpop.permute.xlu0 %1175 }
0x1291   :  { %v2097_v38 = vmul.f32 %v1814_v29, %v1176_v37 }
0x1293   :  { %v1193_v42 = vrot.slane %v2097_v38, 7 }
0x1295   :  { %v1194_v43 = vsel %vm341_vm3, %v1193_v42, %v1179_v39 }
0x1296   :  { %1195 = vrot.lane.b32.xlu0 %v1194_v43, %s1838_s3 }
0x1308   :  { %v1196_v44 = vpop.permute.xlu0 %1195 }
0x1309   :  { %1679 = vmatmul.mubr.msk.f32.vlgmr.msra.gmra.mxu1 %vm199_vm4, %v1196_v44 }
0x130a   :  { %1700 = vmatprep.mubr.msk.f32.mxu1 %vm1836_vm2, %v1835_v0 }
0x13c9   :  { %v1265_v47 = vpop.f32.mrf.mxu1 }
0x13ca   :  { %v1270_v49 = vrot.slane %v1265_v47, 1  ;;  %v1273_v50 = vadd.f32 %v1265_v47, %v1191_v46 }
0x13cb   :  { %v1680_v52 = vpop.f32.mrf.mxu1 }
0x13cc   :  { %v1274_v53 = vadd.f32 %v1270_v49, %v1192_v51  ;;  %1819 = vtanh.f32 %v1273_v50  ;;  %v1523_v56 = vmul.f32 -1.442695, %v1273_v50 }
0x13ce   :  { %1821 = vtanh.f32 %v1274_v53  ;;  %v1524_v57 = vmul.f32 -1.442695, %v1274_v53 }
0x13cf   :  { %1823 = vpow2.f32 %v1523_v56 }
0x13d0   :  { %1825 = vpow2.f32 %v1524_v57 }
0x13d9   :  { %v1820_v54 = vpop.eup %1819 }
0x13da   :  { %1293 = vrot.lane.b32.xlu1 %v1820_v54, %s1837_s10 }
0x13db   :  { %v1822_v55 = vpop.eup %1821 }
0x13dc   :  { %1295 = vrot.lane.b32.xlu0 %v1822_v55, %s1837_s10  ;;  %v1824_v58 = vpop.eup %1823 }
0x13dd   :  { %v1826_v63 = vpop.eup %1825  ;;  %v1281_v1 = vadd.f32 1.0, %v1824_v58 }
0x13de   :  { %v1282_v2 = vadd.f32 1.0, %v1826_v63 }
0x13df   :  { %1827 = vrcp.f32 %v1281_v1 }
0x13e0   :  { %1829 = vrcp.f32 %v1282_v2 }
0x13ec   :  { %v1828_v3 = vpop.eup %1827 }
0x13ed   :  { %v1830_v10 = vpop.eup %1829  ;;  %v1289_v13 = vmul.f32 %v1828_v3, %v1167_v33 }
0x13ee   :  { %v1290_v16 = vmul.f32 %v1830_v10, %v1168_v6 }
0x144c   :  { %v1294_v8 = vpop.permute.xlu1 %1293 }
0x144d   :  { %v1299_v9 = vmul.f32 %v1828_v3, %v1294_v8 }
0x144e   :  { %v1296_v11 = vpop.permute.xlu0 %1295 }
0x144f   :  { %1303 = vrot.lane.b32.xlu1 %v1299_v9, %s1838_s3  ;;  %v1300_v12 = vmul.f32 %v1830_v10, %v1296_v11 }
0x1451   :  { %1305 = vrot.lane.b32.xlu0 %v1300_v12, %s1838_s3 }
0x14c1   :  { %v1304_v14 = vpop.permute.xlu1 %1303 }
0x14c2   :  { %v1309_v15 = vadd.f32 %v1304_v14, %v1289_v13 }
0x14c3   :  { %v1306_v17 = vpop.permute.xlu0 %1305 }
0x14c4   :  { %1831 = vtanh.f32 %v1309_v15  ;;  %v1310_v18 = vadd.f32 %v1306_v17, %v1290_v16 }
0x14c6   :  { %1833 = vtanh.f32 %v1310_v18 }
0x14d1   :  { %v1832_v19 = vpop.eup %1831 }
0x14d2   :  { %1315 = vrot.lane.b32.xlu1 %v1832_v19, %s1837_s10 }
0x14d3   :  { %v1834_v20 = vpop.eup %1833 }
0x14d4   :  { %1317 = vrot.lane.b32.xlu0 %v1834_v20, %s1837_s10 }
0x14d6   :  { %329 = vrot.lane.b32.xlu1 %v1957_v48, %s1838_s3  ;;  %v31_v48 = vld [vmem:[%s2189_s4 + $0x10] sm:$0xff] }
0x14d8   :  { %331 = vrot.lane.b32.xlu0 %v1954_v45, %s1838_s3  ;;  %v32_v45 = vld [vmem:[%s2189_s4 + $0x18] sm:$0xff] }
0x14d9   :  { %1682 = vmatpush3.msra.mxu0 %v32_v45  ;;  %1693 = vmatpush3.msra.mxu1 %v32_v45 }
0x14da   :  { %473 = vrot.lane.b32.xlu1 %v1982_v24, %s1838_s3  ;;  %1683 = vmatprep.subr.mxu0 %v1835_v0  ;;  %v29_v24 = vld [vmem:[%s2189_s4] sm:$0xff] }
0x14db   :  { %1694 = vmatprep.subr.mxu1 %v1835_v0  ;;  %1684 = vmatpush3.msra.mxu0 %v31_v48 }
0x14dc   :  { %475 = vrot.lane.b32.xlu0 %v1980_v23, %s1838_s3  ;;  %v30_v23 = vld [vmem:[%s2189_s4 + $0x8] sm:$0xff]  ;;  %1695 = vmatpush3.msra.mxu1 %v31_v48 }
0x14dd   :  { %1685 = vmatprep.subr.mxu0 %v1835_v0  ;;  %1696 = vmatprep.subr.mxu1 %v1835_v0 }
0x14de   :  { %615 = vrot.lane.b32.xlu1 %v2007_v62, %s1838_s3  ;;  %1686 = vmatpush3.msra.mxu0 %v30_v23 }
0x14df   :  { %1697 = vmatpush3.msra.mxu1 %v30_v23  ;;  %1687 = vmatprep.subr.mxu0 %v1835_v0 }
0x14e0   :  { %617 = vrot.lane.b32.xlu0 %v2005_v61, %s1838_s3  ;;  %1698 = vmatprep.subr.mxu1 %v1835_v0 }
0x14e1   :  { %1688 = vmatpush3.msra.mxu0 %v29_v24  ;;  %1699 = vmatpush3.msra.mxu1 %v29_v24 }
0x14e2   :  { %757 = vrot.lane.b32.xlu1 %v2032_v41, %s1838_s3 }
0x14e4   :  { %759 = vrot.lane.b32.xlu0 %v2030_v40, %s1838_s3 }
0x14e6   :  { %899 = vrot.lane.b32.xlu1 %v2057_v22, %s1838_s3 }
0x14e8   :  { %901 = vrot.lane.b32.xlu0 %v2055_v21, %s1838_s3 }
0x14ea   :  { %1041 = vrot.lane.b32.xlu1 %v2082_v60, %s1838_s3 }
0x14ec   :  { %1043 = vrot.lane.b32.xlu0 %v2080_v59, %s1838_s3 }
0x14ee   :  { %1183 = vrot.lane.b32.xlu1 %v1179_v39, %s1838_s3 }
0x14f0   :  { %1185 = vrot.lane.b32.xlu0 %v2097_v38, %s1838_s3 }
0x1544   :  { %v1316_v61 = vpop.permute.xlu1 %1315 }
0x1545   :  { %v1321_v62 = vmul.f32 %v1828_v3, %v1316_v61 }
0x1546   :  { %v1318_v40 = vpop.permute.xlu0 %1317 }
0x1547   :  { %1325 = vrot.lane.b32.xlu1 %v1321_v62, %s1838_s3  ;;  %v1322_v41 = vmul.f32 %v1830_v10, %v1318_v40 }
0x1548   :  { %v330_v21 = vpop.permute.xlu1 %329 }
0x1549   :  { %336 = vst.msk [vmem:[#allocation3] sm:$0x1] %vm335_vm5, %v330_v21  ;;  %1327 = vrot.lane.b32.xlu0 %v1322_v41, %s1838_s3 }
0x154a   :  { %v332_v22 = vpop.permute.xlu0 %331 }
0x154b   :  { %337 = vst.msk [vmem:[#allocation3 + $0x8] sm:$0x1] %vm335_vm5, %v332_v22 }
0x154c   :  { %v474_v59 = vpop.permute.xlu1 %473 }
0x154d   :  { %479 = vst.msk [vmem:[#allocation3 + $0x1] sm:$0x1] %vm335_vm5, %v474_v59 }
0x154e   :  { %v476_v0 = vpop.permute.xlu0 %475 }
0x154f   :  { %480 = vst.msk [vmem:[#allocation3 + $0x9] sm:$0x1] %vm335_vm5, %v476_v0 }
0x1550   :  { %v616_v60 = vpop.permute.xlu1 %615 }
0x1551   :  { %621 = vst.msk [vmem:[#allocation3 + $0x2] sm:$0x1] %vm335_vm5, %v616_v60 }
0x1552   :  { %v618_v25 = vpop.permute.xlu0 %617 }
0x1553   :  { %622 = vst.msk [vmem:[#allocation3 + $0xa] sm:$0x1] %vm335_vm5, %v618_v25 }
0x1554   :  { %v758_v26 = vpop.permute.xlu1 %757 }
0x1555   :  { %763 = vst.msk [vmem:[#allocation3 + $0x3] sm:$0x1] %vm335_vm5, %v758_v26 }
0x1556   :  { %v760_v27 = vpop.permute.xlu0 %759 }
0x1557   :  { %764 = vst.msk [vmem:[#allocation3 + $0xb] sm:$0x1] %vm335_vm5, %v760_v27 }
0x1558   :  { %v900_v28 = vpop.permute.xlu1 %899 }
0x1559   :  { %905 = vst.msk [vmem:[#allocation3 + $0x4] sm:$0x1] %vm335_vm5, %v900_v28 }
0x155a   :  { %v902_v29 = vpop.permute.xlu0 %901 }
0x155b   :  { %906 = vst.msk [vmem:[#allocation3 + $0xc] sm:$0x1] %vm335_vm5, %v902_v29 }
0x155c   :  { %v1042_v4 = vpop.permute.xlu1 %1041 }
0x155d   :  { %1047 = vst.msk [vmem:[#allocation3 + $0x5] sm:$0x1] %vm335_vm5, %v1042_v4 }
0x155e   :  { %v1044_v30 = vpop.permute.xlu0 %1043 }
0x155f   :  { %1048 = vst.msk [vmem:[#allocation3 + $0xd] sm:$0x1] %vm335_vm5, %v1044_v30 }
0x1560   :  { %v1184_v31 = vpop.permute.xlu1 %1183 }
0x1561   :  { %1189 = vst.msk [vmem:[#allocation3 + $0x6] sm:$0x1] %vm335_vm5, %v1184_v31 }
0x1562   :  { %v1186_v32 = vpop.permute.xlu0 %1185 }
0x1563   :  { %1190 = vst.msk [vmem:[#allocation3 + $0xe] sm:$0x1] %vm335_vm5, %v1186_v32 }
0x15b9   :  { %v1326_v33 = vpop.permute.xlu1 %1325 }
0x15ba   :  { %1331 = vst.msk [vmem:[#allocation3 + $0x7] sm:$0x1] %vm335_vm5, %v1326_v33 }
0x15bb   :  { %v1328_v5 = vpop.permute.xlu0 %1327 }
0x15bc   :  { %1332 = vst.msk [vmem:[#allocation3 + $0xf] sm:$0x1] %vm335_vm5, %v1328_v5 }
0x15c1   :  { %v1333_v34 = vld [vmem:[#allocation3] sm:$0xff] }
0x15c2   :  { %1690 = vmatmul.mubr.msk.f32.vlgmr.msra.gmra.mxu0 %vm199_vm4, %v1333_v34 }
0x15c3   :  { %v1416_v6 = vld [vmem:[#allocation3 + $0x8] sm:$0xff] }
0x15c4   :  { %1701 = vmatmul.mubr.msk.f32.vlgmr.msra.gmra.mxu1 %vm199_vm4, %v1416_v6 }
0x1682   :  { %v1409_v7 = vpop.f32.mrf.mxu0 }
0x1683   :  { %v1410_v36 = vadd.f32 %v1525_v35, %v1409_v7 }
0x1684   :  { %v1691_v37 = vpop.f32.mrf.mxu0  ;;  %v1486_v38 = vpop.f32.mrf.mxu1 }
0x1685   :  { %1414 = vst.msk [vmem:[%s2191_s6] sm:$0xff] %vm1413_vm6, %v1410_v36  ;;  %v1487_v39 = vadd.f32 %v1525_v35, %v1486_v38 }
0x1686   :  { %v1702_v42 = vpop.f32.mrf.mxu1 }
0x1687   :  { %1528 = vst.msk [vmem:[%s2191_s6 + $0x8] sm:$0xff] %vm1413_vm6, %v1487_v39 }

</bundles_post_ra>
